<compile_context>
chip_gen: v5e
topology: v5e:2x2
jax: 0.10.0
libtpu: 0.0.40
codegen_flags: <defaults>
</compile_context>

<pallas_src>
import functools

import jax
import jax.numpy as jnp
from jax.experimental import pallas as pl
from jax.experimental.pallas import tpu as pltpu

NEG_SLOPE = 0.2  # GATv2Conv default leaky_relu negative_slope


# --------------------------------------------------------------------------
# Kernel 1: source-side linear transform  xl = x @ Wl + bl   (all heads packed)
# --------------------------------------------------------------------------
def _lin_l_kernel(x_ref, w_ref, b_ref, out_ref):
    """x_ref: [TM, Fin] bf16, w_ref: [Fin, HC] bf16, b_ref: [1, HC] f32."""
    out_ref[...] = jnp.dot(x_ref[...], w_ref[...],
                           preferred_element_type=jnp.float32) + b_ref[...]


# --------------------------------------------------------------------------
# Kernel 2: GATv2 attention + aggregation for one row tile of target nodes.
# --------------------------------------------------------------------------
def _gatv2_attn_kernel(xl_ref, xrow_ref, wr_ref, br_ref, att_ref, bias_ref,
                       adj_ref, out_ref, *, apply_elu):
    """One GATv2Conv layer (heads packed on lanes), one row tile of targets.

    xl_ref   : [N, HC]   f32   precomputed lin_l features of ALL source nodes j
    xrow_ref : [TI, Fin] bf16  raw features of this tile's target nodes i
    wr_ref   : [Fin, HC] bf16  lin_r weight (heads packed on lanes)
    br_ref   : [1, HC]   f32   lin_r bias
    att_ref  : [HC, HC]  f32   A[h*C+c', h*C+c] = att[h, c']  (block structure)
    bias_ref : [1, HC]   f32   output bias
    adj_ref  : [TI, N]   f32   adj[i, j] = 1 iff edge j -> i (incl. self loop)
    out_ref  : [TI, HC]  f32   heads concatenated along lanes
    """
    hc = bias_ref.shape[-1]
    n = xl_ref.shape[0]
    ti = xrow_ref.shape[0]

    xl = xl_ref[...]                                                 # [N, HC]
    xr = jnp.dot(xrow_ref[...], wr_ref[...],
                 preferred_element_type=jnp.float32) + br_ref[...]   # [TI, HC]

    # GATv2 scoring: e[i, j, h] = att_h . leaky_relu(xl[j] + xr[i]).
    s = xl[None, :, :] + xr[:, None, :]               # [TI, N, HC]
    s = jnp.where(s > 0, s, NEG_SLOPE * s)            # leaky_relu
    # Per-head C-contraction as one MXU matmul; the block-structured att matrix
    # also replicates each head's score across its C lanes (stays lane-dense).
    e = jnp.dot(s.reshape(ti * n, hc), att_ref[...],
                preferred_element_type=jnp.float32).reshape(ti, n, hc)

    # Masked softmax over source nodes j (axis 1), in f32.
    mask = (adj_ref[...] > 0.0)[:, :, None]           # [TI, N, 1]
    e = jnp.where(mask, e, jnp.float32(-1e30))
    m = jnp.max(e, axis=1, keepdims=True)             # [TI, 1, HC]
    p = jnp.exp(e - m)
    p = jnp.where(mask, p, 0.0)
    denom = jnp.sum(p, axis=1, keepdims=True)         # [TI, 1, HC]
    alpha = p * pl.reciprocal(denom, approx=True)     # [TI, N, HC]  (EUP)

    # Aggregate messages: out[i, h*C+c] = sum_j alpha_h[i, j] * xl[j, h*C+c].
    out = jnp.sum(alpha * xl[None, :, :], axis=1) + bias_ref[...]    # [TI, HC]

    if apply_elu:  # fused ELU for the first layer
        out = jnp.where(out > 0, out, jnp.exp(jnp.minimum(out, 0.0)) - 1.0)

    out_ref[...] = out


# --------------------------------------------------------------------------
# Layer wrapper
# --------------------------------------------------------------------------
def gatv2_layer(x, params, adj, *, apply_elu, row_tile=128):
    """x: [N, Fin] -> [N, heads*out_channels] (heads concatenated on lanes)."""
    wl, wr, bl, br, att_outer, bias = params
    n, fin = x.shape
    hc = bias.shape[-1]
    ti = min(row_tile, n)
    assert n % ti == 0, "row tile must divide the number of nodes"
    x_bf = x.astype(jnp.bfloat16)

    # Pass 1: xl = x @ Wl + bl for ALL source nodes (computed once).
    xl = pl.pallas_call(
        _lin_l_kernel,
        out_shape=jax.ShapeDtypeStruct((n, hc), jnp.float32),
        grid=(n // ti,),
        in_specs=[
            pl.BlockSpec((ti, fin), lambda i: (i, 0)),
            pl.BlockSpec((fin, hc), lambda i: (0, 0)),
            pl.BlockSpec((1, hc), lambda i: (0, 0)),
        ],
        out_specs=pl.BlockSpec((ti, hc), lambda i: (i, 0)),
        compiler_params=pltpu.CompilerParams(
            dimension_semantics=("parallel",)),
    )(x_bf, wl, bl)

    # Pass 2: attention scores + masked softmax + aggregation per row tile.
    kernel = functools.partial(_gatv2_attn_kernel, apply_elu=apply_elu)
    return pl.pallas_call(
        kernel,
        out_shape=jax.ShapeDtypeStruct((n, hc), jnp.float32),
        grid=(n // ti,),
        in_specs=[
            pl.BlockSpec((n, hc), lambda i: (0, 0)),    # xl (all source nodes)
            pl.BlockSpec((ti, fin), lambda i: (i, 0)),  # target row tile
            pl.BlockSpec((fin, hc), lambda i: (0, 0)),  # Wr
            pl.BlockSpec((1, hc), lambda i: (0, 0)),    # br
            pl.BlockSpec((hc, hc), lambda i: (0, 0)),   # block att matrix
            pl.BlockSpec((1, hc), lambda i: (0, 0)),    # output bias
            pl.BlockSpec((ti, n), lambda i: (i, 0)),    # adj row tile
        ],
        out_specs=pl.BlockSpec((ti, hc), lambda i: (i, 0)),
        compiler_params=pltpu.CompilerParams(
            dimension_semantics=("parallel",)),
    )(xl, x_bf, wr, br, att_outer, bias, adj)


# --------------------------------------------------------------------------
# Host-side helpers
# --------------------------------------------------------------------------
def build_adj(edge_index, num_nodes):
    """adj[i, j] = 1 iff edge j -> i exists; self loops added (PyG default)."""
    src, dst = edge_index[0], edge_index[1]
    adj = jnp.zeros((num_nodes, num_nodes), jnp.float32)
    adj = adj.at[dst, src].set(1.0)
    adj = jnp.maximum(adj, jnp.eye(num_nodes, dtype=jnp.float32))
    return adj


def _glorot(key, shape):
    fan_in, fan_out = shape[-2], shape[-1]
    limit = (6.0 / (fan_in + fan_out)) ** 0.5
    return jax.random.uniform(key, shape, jnp.float32, -limit, limit)


def init_gatv2_params(key, in_ch, out_ch, heads):
    """Returns (Wl, Wr [Fin,HC] bf16, bl, br [1,HC], att_outer [HC,HC], bias [1,HC])."""
    k1, k2, k3 = jax.random.split(key, 3)
    hc = heads * out_ch
    wl = _glorot(k1, (in_ch, hc)).astype(jnp.bfloat16)   # lin_l (heads packed)
    wr = _glorot(k2, (in_ch, hc)).astype(jnp.bfloat16)   # lin_r (heads packed)
    att = _glorot(k3, (heads, out_ch))                   # attention vector a
    bl = jnp.zeros((1, hc), jnp.float32)
    br = jnp.zeros((1, hc), jnp.float32)
    bias = jnp.zeros((1, hc), jnp.float32)
    # Block-structured attention matrix: A[h*C+c', h*C+c] = att[h, c'].
    # One MXU matmul with A == per-head C-contraction + lane replication.
    r = jnp.arange(hc)
    same_head = (r[:, None] // out_ch) == (r[None, :] // out_ch)
    att_outer = jnp.where(same_head, att.reshape(hc, 1), 0.0)
    return (wl, wr, bl, br, att_outer, bias)


def gat_forward(x, edge_index, params1, params2, num_nodes):
    adj = build_adj(edge_index, num_nodes)
    # F.dropout(..., training=False) == identity.
    h = gatv2_layer(x, params1, adj, apply_elu=True)       # conv1 + ELU (fused)
    # dropout identity
    return gatv2_layer(h, params2, adj, apply_elu=False)   # conv2


if __name__ == "__main__":
    key = jax.random.PRNGKey(0)

    # Model hyperparameters (GAT.__init__ defaults: heads=8, heads_out=1).
    num_nodes = 16
    input_size = 16
    embedding_size = 32
    hidden_channels = 16
    heads = 8
    heads_out = 1

    kx, kp1, kp2 = jax.random.split(key, 3)
    x = jax.random.normal(kx, (num_nodes, input_size), jnp.float32)

    # Deterministic directed edge list [2, E] (symmetric, no self loops).
    src = jnp.arange(num_nodes, dtype=jnp.int32)
    dst = (src * 3 + 1) % num_nodes
    edge_index = jnp.stack([jnp.concatenate([src, dst]),
                            jnp.concatenate([dst, src])])

    params1 = init_gatv2_params(kp1, input_size, hidden_channels, heads)
    params2 = init_gatv2_params(kp2, hidden_channels * heads, embedding_size,
                                heads_out)

    out = gat_forward(x, edge_index, params1, params2, num_nodes)
    out = jax.block_until_ready(out)
    assert out.shape == (num_nodes, embedding_size), out.shape
    assert out.dtype == jnp.float32
    assert bool(jnp.all(jnp.isfinite(out)))
    print("KERNEL_OK")
</pallas_src>

<mosaic_0001>
module attributes {stable_mosaic.version = 11 : i64} {
  func.func @_lin_l_kernel(%arg0: i32, %arg1: memref<16x16xbf16, #tpu.memory_space<vmem>>, %arg2: memref<16x128xbf16, #tpu.memory_space<vmem>>, %arg3: memref<1x128xf32, #tpu.memory_space<vmem>>, %arg4: memref<16x128xf32, #tpu.memory_space<vmem>>) attributes {dimension_semantics = [#tpu.dimension_semantics<parallel>], iteration_bounds = array<i64: 1>, scalar_prefetch = 0 : i64, scratch_operands = 0 : i64, tpu.core_type = #tpu.core_type<tc>, window_params = [{transform_indices = @transform_0, window_bounds = array<i64: 16, 16>}, {pipeline_mode = #tpu.pipeline_mode<synchronous>, transform_indices = @transform_1, window_bounds = array<i64: 16, 128>}, {pipeline_mode = #tpu.pipeline_mode<synchronous>, transform_indices = @transform_2, window_bounds = array<i64: 1, 128>}, {transform_indices = @transform_3, window_bounds = array<i64: 16, 128>}]} {
    %c0 = arith.constant 0 : index
    %c0_0 = arith.constant 0 : index
    %0 = vector.load %arg1[%c0, %c0_0] : memref<16x16xbf16, #tpu.memory_space<vmem>>, vector<16x16xbf16>
    %c0_1 = arith.constant 0 : index
    %c0_2 = arith.constant 0 : index
    %1 = vector.load %arg2[%c0_1, %c0_2] : memref<16x128xbf16, #tpu.memory_space<vmem>>, vector<16x128xbf16>
    %cst = arith.constant dense<0.000000e+00> : vector<16x128xf32>
    %2 = tpu.matmul %0, %1, %cst {dimension_numbers = #tpu.dot_dimension_numbers<[1], [0], [0], [1], [0, 0, 1, 1], [], []>} : vector<16x16xbf16>, vector<16x128xbf16>, vector<16x128xf32> -> vector<16x128xf32>
    %c0_3 = arith.constant 0 : index
    %c0_4 = arith.constant 0 : index
    %3 = vector.load %arg3[%c0_3, %c0_4] : memref<1x128xf32, #tpu.memory_space<vmem>>, vector<1x128xf32>
    %4 = vector.broadcast %3 : vector<1x128xf32> to vector<16x128xf32>
    %5 = arith.addf %2, %4 : vector<16x128xf32>
    %c0_5 = arith.constant 0 : index
    %c0_6 = arith.constant 0 : index
    %6 = vector.load %arg4[%c0_5, %c0_6] : memref<16x128xf32, #tpu.memory_space<vmem>>, vector<16x128xf32>
    tpu.vector_store %arg4[%c0_5, %c0_6], %5 {strides = array<i32>} : memref<16x128xf32, #tpu.memory_space<vmem>>, vector<16x128xf32>,
    return
  }
  func.func @transform_0(%arg0: i32) -> (i32, i32) {
    %c0_i32 = arith.constant 0 : i32
    %c0_i32_0 = arith.constant 0 : i32
    return %arg0, %c0_i32 : i32, i32
  }
  func.func @transform_1(%arg0: i32) -> (i32, i32) {
    %c0_i32 = arith.constant 0 : i32
    %c0_i32_0 = arith.constant 0 : i32
    %c0_i32_1 = arith.constant 0 : i32
    return %c0_i32, %c0_i32_0 : i32, i32
  }
  func.func @transform_2(%arg0: i32) -> (i32, i32) {
    %c0_i32 = arith.constant 0 : i32
    %c0_i32_0 = arith.constant 0 : i32
    %c0_i32_1 = arith.constant 0 : i32
    return %c0_i32, %c0_i32_0 : i32, i32
  }
  func.func @transform_3(%arg0: i32) -> (i32, i32) {
    %c0_i32 = arith.constant 0 : i32
    %c0_i32_0 = arith.constant 0 : i32
    return %arg0, %c0_i32 : i32, i32
  }
}

</mosaic_0001>

<bundles_post_ra>
// kernel: tpu_custom_call.1
= control target key start
LH: loop header
LB: loop body
LE: loop exit
PB: predicated region body
PF: predicated region fallthrough
CT: control target
= control target key end

     0   :  { %8 = vsyncpa [#allocation3], 0  ;;  %s243_s0 = inlined_call_operand.hbm [shape: bf16[16,16], index: 0, kind: input, shape index: {}]   ;;  %s244_s1 = inlined_call_operand.hbm [shape: bf16[16,128], index: 1, kind: input, shape index: {}]   ;;  %s245_s2 = inlined_call_operand.vmem [shape: f32[1,128], index: 2, kind: input, shape index: {}]   ;;  %s246_s3 = inlined_call_operand.hbm [shape: f32[16,128], index: 3, kind: output, shape index: {}]  }
   0x1   :  { %9 = vsyncpa [#allocation6], 0 }
   0x2   :  { %10 = vsyncpa [#allocation4], 0  ;;  %s15_s14 = sshll.u32 %s243_s0, 4  ;;  %s204_s15 = smov [#allocation2]   ;;  %s16_s14 = int_to_ptr.hbm [resolvable:$true] %s15_s14 }
   0x3   :  { %s17_s16 = sshll.u32 %s204_s15, 4  ;;  %s28_s19 = sshll.u32 %s244_s1, 4  ;;  %s18_s16 = int_to_ptr.vmem [resolvable:$true] %s17_s16  ;;  %s29_s19 = int_to_ptr.hbm [resolvable:$true] %s28_s19 }
   0x4   :  { %s205_s20 = smov 64   ;;  %s206_s21 = smov 4  }
   0x5   :  { %23 = dma.hbm_to_vmem [thread:$0]  %s16_s14, 128, %s18_s16, [#allocation3], %s205_s20, %s205_s20, %s206_s21  }
   0x6   :  { %s207_s22 = smov [#allocation5]  }
   0x7   :  { %s30_s23 = sshll.u32 %s207_s22, 4  ;;  %s31_s23 = int_to_ptr.vmem [resolvable:$true] %s30_s23 }
   0x8   :  { %36 = dma.hbm_to_vmem [thread:$0]  %s29_s19, 128, %s31_s23, [#allocation6], %s205_s20, %s205_s20, %s206_s21  }
   0x9   :  { %198 = dma.done.wait [#allocation3], 128  }
   0xa   :  { %199 = vsyncadd [#allocation3], 4294967168 }
   0xb   :  { %200 = dma.done.wait [#allocation6], 128  }
   0xc   :  { %201 = vsyncadd [#allocation6], 4294967168  ;;  %v117_v0 = vld [vmem:[#allocation5] sm:$0xff]  ;;  %v116_v1 = vld [vmem:[#allocation2] sm:$0xff]  ;;  %vm67_vm0 = vcmask 130048   ;;  %s208_s1 = smov [#allocation7]  }
   0xd   :  { %78 = vmatpush.bf16.msra.mxu0 %v117_v0  ;;  %v125_v2 = vld [vmem:[%s245_s2] ss:$0 sm:$0xff]  ;;  %s91_s25 = sshll.u32 %s208_s1, 4  ;;  %s93_s28 = sshll.u32 %s246_s3, 4  ;;  %s92_s25 = int_to_ptr.vmem [resolvable:$true] %s91_s25  ;;  %s94_s28 = int_to_ptr.hbm [resolvable:$true] %s93_s28 }
   0xe   :  { %s209_s29 = smov 128   ;;  %s210_s30 = smov 8  }
  0x10   :  { %115 = vmatmul.msk.bf16.vlgmr.msra.gmra.mxu0 %vm67_vm0, %v116_v1 }
  0x8d   :  { %v80_v3 = vpop.f32.mrf.mxu0 }
  0x8e   :  { %v81_v4 = vadd.f32 %v125_v2, %v80_v3 }
  0x90   :  { %85 = vst [vmem:[#allocation7] sm:$0xff] %v81_v4 }
  0x95   :  { %v82_v5 = vpop.f32.mrf.mxu0 }
  0x96   :  { %v83_v6 = vadd.f32 %v125_v2, %v82_v5 }
  0x98   :  { %86 = vst [vmem:[#allocation7 + $0x8] sm:$0xff] %v83_v6 }
  0x99   :  { %99 = dma.vmem_to_hbm [thread:$0]  %s92_s25, 256, %s94_s28, [#allocation4], %s209_s29, %s209_s29, %s210_s30  }
  0x9a   :  { %202 = dma.done.wait [#allocation4], 256  }
  0x9b   :  { %203 = vsyncadd [#allocation4], 4294967040 }
  0x9c   :  { %104 = vsyncpa [#allocation3], 1 }
  0x9d   :  { %105 = vsyncpa [#allocation6], 1 }
  0x9e   :  { %106 = vsyncpa [#allocation4], 1 }

</bundles_post_ra>
